<compile_context>
chip_gen: v6e
topology: v6e:2x2x1
jax: 0.10.0
libtpu: 0.0.40
codegen_flags: <defaults>
</compile_context>

<pallas_src>
import math
import jax
import jax.numpy as jnp
from jax.experimental import pallas as pl
from jax.experimental.pallas import tpu as pltpu


def _two_head_mlp_kernel(x1_ref, x2_ref,
                         w1_ref, b1_ref, w4_ref, b4_ref,
                         wcat_ref, bcat_ref,
                         o_ref):
    # ---- Layer 1, head 1: f32 tile -> bf16 MXU operand, f32 accumulate ----
    h1 = jnp.dot(x1_ref[...].astype(jnp.bfloat16), w1_ref[...],
                 preferred_element_type=jnp.float32)
    h1 = jnp.maximum(h1 + b1_ref[...], 0.0).astype(jnp.bfloat16)
    # ---- Layer 1, head 2 ----
    h2 = jnp.dot(x2_ref[...].astype(jnp.bfloat16), w4_ref[...],
                 preferred_element_type=jnp.float32)
    h2 = jnp.maximum(h2 + b4_ref[...], 0.0).astype(jnp.bfloat16)
    # Free lane-axis concat: each half is hid lanes (256, multiple of 128),
    # so this is a vreg relabel, not an XLU shuffle.
    h = jnp.concatenate([h1, h2], axis=-1)
    # ---- Block-diagonal fused layer 2: lands as lane-dense (tb, 2*out) ----
    y = jnp.dot(h, wcat_ref[...], preferred_element_type=jnp.float32)
    o_ref[...] = jnp.maximum(y + bcat_ref[...], 0.0).astype(o_ref.dtype)


def _round_up(x, m):
    return ((x + m - 1) // m) * m


def prepare_params(params):
    """One-time parameter packing (do NOT call per forward step).

    `params` holds w1,b1,w2,b2,w4,b4,w5,b5 with weights pre-transposed to
    (in_features, out_features).  Returns bf16 weights, f32 (1,N) bias rows,
    and the block-diagonal fused layer-2 weight Wcat = blockdiag(W2, W5).
    """
    w1 = jnp.asarray(params["w1"])
    w2 = jnp.asarray(params["w2"])
    w4 = jnp.asarray(params["w4"])
    w5 = jnp.asarray(params["w5"])
    inp, hid = w1.shape
    out = w2.shape[1]

    wcat = jnp.zeros((2 * hid, 2 * out), jnp.float32)
    wcat = wcat.at[:hid, :out].set(w2.astype(jnp.float32))
    wcat = wcat.at[hid:, out:].set(w5.astype(jnp.float32))

    bcat = jnp.concatenate(
        [jnp.asarray(params["b2"]).reshape(-1),
         jnp.asarray(params["b5"]).reshape(-1)]).reshape(1, -1)

    return {
        "w1": w1.astype(jnp.bfloat16),
        "w4": w4.astype(jnp.bfloat16),
        "wcat": wcat.astype(jnp.bfloat16),
        "b1": jnp.asarray(params["b1"]).reshape(1, -1).astype(jnp.float32),
        "b4": jnp.asarray(params["b4"]).reshape(1, -1).astype(jnp.float32),
        "bcat": bcat.astype(jnp.float32),
        "inp": inp, "hid": hid, "out": out,
    }


def _vmem_estimate_bytes(tb, inp, hid, out, out_itemsize):
    x = 2 * 2 * tb * inp * 4                       # two f32 input tiles, double-buffered
    o = 2 * tb * (2 * out) * out_itemsize          # output tile, double-buffered
    w = 2 * (2 * inp * hid * 2                     # W1, W4 (bf16)
             + (2 * hid) * (2 * out) * 2           # Wcat (bf16)
             + (2 * hid + 2 * out) * 4)            # bias rows (f32)
    interm = (2 * tb * hid * 4                     # h1, h2 f32
              + tb * 2 * hid * 2                   # h_cat bf16
              + tb * 2 * out * 4)                  # y f32
    return x + o + w + interm


def phi_critic_deepset_two_heads(inp1, inp2, prepared, *, block_rows=2048,
                                 out_dtype=jnp.float32, return_fused=False):
    """inp1/inp2: (B, inp) f32.  `prepared` = prepare_params(raw_params).

    Returns (x1, x2) like the PyTorch module, or the fused (B, 2*out) slab if
    return_fused=True (avoids any chance of extra HBM slice passes; heads are
    fused[:, :out] and fused[:, out:])."""
    B, inp = inp1.shape
    hid, out = prepared["hid"], prepared["out"]

    # Balanced batch tiles, multiple of 8 (sublane).  No explicit padding:
    # grid = cdiv(B, tb) and Pallas handles the partial boundary block.
    n_steps = max(1, pl.cdiv(B, block_rows))
    tb = _round_up(pl.cdiv(B, n_steps), 8)
    grid = (pl.cdiv(B, tb),)

    vmem_est = _vmem_estimate_bytes(tb, inp, hid, out, jnp.dtype(out_dtype).itemsize)
    vmem_limit = int(min(max(int(vmem_est * 1.5) + (2 << 20), 16 << 20), 60 << 20))

    def row_spec(ncols):        # tiled along batch
        return pl.BlockSpec((tb, ncols), lambda i: (i, 0))

    def const_spec(shape):      # resident across the whole grid
        return pl.BlockSpec(shape, lambda i: (0, 0))

    fused = pl.pallas_call(
        _two_head_mlp_kernel,
        out_shape=jax.ShapeDtypeStruct((B, 2 * out), out_dtype),
        grid=grid,
        in_specs=[
            row_spec(inp),                      # x1 tile (f32, cast in-kernel)
            row_spec(inp),                      # x2 tile
            const_spec((inp, hid)),             # W1  (bf16)
            const_spec((1, hid)),               # b1  (f32 row)
            const_spec((inp, hid)),             # W4  (bf16)
            const_spec((1, hid)),               # b4  (f32 row)
            const_spec((2 * hid, 2 * out)),     # Wcat = blockdiag(W2, W5) (bf16)
            const_spec((1, 2 * out)),           # bcat = [b2 | b5] (f32 row)
        ],
        out_specs=row_spec(2 * out),
        compiler_params=pltpu.CompilerParams(
            dimension_semantics=("parallel",),   # megacore sharding on v7x
            vmem_limit_bytes=vmem_limit),
    )(inp1, inp2,
      prepared["w1"], prepared["b1"], prepared["w4"], prepared["b4"],
      prepared["wcat"], prepared["bcat"])

    if return_fused:
        return fused
    # These slices normally fuse into the consumer; pass return_fused=True to
    # guarantee no extra HBM pass over the output.
    return fused[:, :out], fused[:, out:]


def xavier_uniform(key, fan_in, fan_out, gain=1.0, dtype=jnp.float32):
    # Matches torch.nn.init.xavier_uniform_(gain=1): U(-a, a), a = sqrt(6/(fan_in+fan_out)).
    a = gain * math.sqrt(6.0 / (fan_in + fan_out))
    return jax.random.uniform(key, (fan_in, fan_out), dtype=dtype, minval=-a, maxval=a)


if __name__ == "__main__":
    INP, HID, OUT = 32, 256, 64
    BATCH = 8

    key = jax.random.PRNGKey(0)
    k1, k2, kw1, kw2, kw4, kw5 = jax.random.split(key, 6)

    inp1 = jax.random.normal(k1, (BATCH, INP), dtype=jnp.float32)
    inp2 = jax.random.normal(k2, (BATCH, INP), dtype=jnp.float32)

    raw_params = {
        "w1": xavier_uniform(kw1, INP, HID), "b1": jnp.zeros((HID,), jnp.float32),
        "w2": xavier_uniform(kw2, HID, OUT), "b2": jnp.zeros((OUT,), jnp.float32),
        "w4": xavier_uniform(kw4, INP, HID), "b4": jnp.zeros((HID,), jnp.float32),
        "w5": xavier_uniform(kw5, HID, OUT), "b5": jnp.zeros((OUT,), jnp.float32),
    }
    prepared = prepare_params(raw_params)   # one-time: bf16 cast + block-diag pack

    y1, y2 = phi_critic_deepset_two_heads(inp1, inp2, prepared)
    jax.block_until_ready((y1, y2))

    # Reference in plain JAX (f32); kernel uses bf16 matmul operands with f32
    # accumulation, so compare with a bf16-appropriate tolerance.
    def mlp_ref(x, wa, ba, wb, bb):
        h = jnp.maximum(x @ wa + ba, 0.0)
        return jnp.maximum(h @ wb + bb, 0.0)

    r1 = mlp_ref(inp1, raw_params["w1"], raw_params["b1"], raw_params["w2"], raw_params["b2"])
    r2 = mlp_ref(inp2, raw_params["w4"], raw_params["b4"], raw_params["w5"], raw_params["b5"])

    assert y1.shape == (BATCH, OUT) and y2.shape == (BATCH, OUT)
    assert jnp.allclose(y1, r1, atol=2e-2, rtol=2e-2)
    assert jnp.allclose(y2, r2, atol=2e-2, rtol=2e-2)

    print("KERNEL_OK")
</pallas_src>

<mosaic_0001>
module attributes {stable_mosaic.version = 11 : i64} {
  func.func @_two_head_mlp_kernel(%arg0: i32, %arg1: memref<8x32xf32, #tpu.memory_space<vmem>>, %arg2: memref<8x32xf32, #tpu.memory_space<vmem>>, %arg3: memref<32x256xbf16, #tpu.memory_space<vmem>>, %arg4: memref<1x256xf32, #tpu.memory_space<vmem>>, %arg5: memref<32x256xbf16, #tpu.memory_space<vmem>>, %arg6: memref<1x256xf32, #tpu.memory_space<vmem>>, %arg7: memref<512x128xbf16, #tpu.memory_space<vmem>>, %arg8: memref<1x128xf32, #tpu.memory_space<vmem>>, %arg9: memref<8x128xf32, #tpu.memory_space<vmem>>) attributes {dimension_semantics = [#tpu.dimension_semantics<parallel>], iteration_bounds = array<i64: 1>, scalar_prefetch = 0 : i64, scratch_operands = 0 : i64, tpu.core_type = #tpu.core_type<tc>, window_params = [{transform_indices = @transform_0, window_bounds = array<i64: 8, 32>}, {transform_indices = @transform_1, window_bounds = array<i64: 8, 32>}, {pipeline_mode = #tpu.pipeline_mode<synchronous>, transform_indices = @transform_2, window_bounds = array<i64: 32, 256>}, {pipeline_mode = #tpu.pipeline_mode<synchronous>, transform_indices = @transform_3, window_bounds = array<i64: 1, 256>}, {pipeline_mode = #tpu.pipeline_mode<synchronous>, transform_indices = @transform_4, window_bounds = array<i64: 32, 256>}, {pipeline_mode = #tpu.pipeline_mode<synchronous>, transform_indices = @transform_5, window_bounds = array<i64: 1, 256>}, {pipeline_mode = #tpu.pipeline_mode<synchronous>, transform_indices = @transform_6, window_bounds = array<i64: 512, 128>}, {pipeline_mode = #tpu.pipeline_mode<synchronous>, transform_indices = @transform_7, window_bounds = array<i64: 1, 128>}, {transform_indices = @transform_8, window_bounds = array<i64: 8, 128>}]} {
    %c0 = arith.constant 0 : index
    %c0_0 = arith.constant 0 : index
    %0 = vector.load %arg1[%c0, %c0_0] : memref<8x32xf32, #tpu.memory_space<vmem>>, vector<8x32xf32>
    %1 = arith.truncf %0 : vector<8x32xf32> to vector<8x32xbf16>
    %c0_1 = arith.constant 0 : index
    %c0_2 = arith.constant 0 : index
    %2 = vector.load %arg3[%c0_1, %c0_2] : memref<32x256xbf16, #tpu.memory_space<vmem>>, vector<32x256xbf16>
    %cst = arith.constant dense<0.000000e+00> : vector<8x256xf32>
    %3 = tpu.matmul %1, %2, %cst {dimension_numbers = #tpu.dot_dimension_numbers<[1], [0], [0], [1], [0, 0, 1, 1], [], []>} : vector<8x32xbf16>, vector<32x256xbf16>, vector<8x256xf32> -> vector<8x256xf32>
    %c0_3 = arith.constant 0 : index
    %c0_4 = arith.constant 0 : index
    %4 = vector.load %arg4[%c0_3, %c0_4] : memref<1x256xf32, #tpu.memory_space<vmem>>, vector<1x256xf32>
    %5 = vector.broadcast %4 : vector<1x256xf32> to vector<8x256xf32>
    %6 = arith.addf %3, %5 : vector<8x256xf32>
    %cst_5 = arith.constant 0.000000e+00 : f32
    %7 = vector.broadcast %cst_5 : f32 to vector<8x256xf32>
    %8 = arith.maximumf %6, %7 : vector<8x256xf32>
    %9 = arith.truncf %8 : vector<8x256xf32> to vector<8x256xbf16>
    %c0_6 = arith.constant 0 : index
    %c0_7 = arith.constant 0 : index
    %10 = vector.load %arg2[%c0_6, %c0_7] : memref<8x32xf32, #tpu.memory_space<vmem>>, vector<8x32xf32>
    %11 = arith.truncf %10 : vector<8x32xf32> to vector<8x32xbf16>
    %c0_8 = arith.constant 0 : index
    %c0_9 = arith.constant 0 : index
    %12 = vector.load %arg5[%c0_8, %c0_9] : memref<32x256xbf16, #tpu.memory_space<vmem>>, vector<32x256xbf16>
    %cst_10 = arith.constant dense<0.000000e+00> : vector<8x256xf32>
    %13 = tpu.matmul %11, %12, %cst_10 {dimension_numbers = #tpu.dot_dimension_numbers<[1], [0], [0], [1], [0, 0, 1, 1], [], []>} : vector<8x32xbf16>, vector<32x256xbf16>, vector<8x256xf32> -> vector<8x256xf32>
    %c0_11 = arith.constant 0 : index
    %c0_12 = arith.constant 0 : index
    %14 = vector.load %arg6[%c0_11, %c0_12] : memref<1x256xf32, #tpu.memory_space<vmem>>, vector<1x256xf32>
    %15 = vector.broadcast %14 : vector<1x256xf32> to vector<8x256xf32>
    %16 = arith.addf %13, %15 : vector<8x256xf32>
    %cst_13 = arith.constant 0.000000e+00 : f32
    %17 = vector.broadcast %cst_13 : f32 to vector<8x256xf32>
    %18 = arith.maximumf %16, %17 : vector<8x256xf32>
    %19 = arith.truncf %18 : vector<8x256xf32> to vector<8x256xbf16>
    %20 = tpu.concatenate %9, %19 in 1 : vector<8x256xbf16>, vector<8x256xbf16> -> vector<8x512xbf16>
    %c0_14 = arith.constant 0 : index
    %c0_15 = arith.constant 0 : index
    %21 = vector.load %arg7[%c0_14, %c0_15] : memref<512x128xbf16, #tpu.memory_space<vmem>>, vector<512x128xbf16>
    %cst_16 = arith.constant dense<0.000000e+00> : vector<8x128xf32>
    %22 = tpu.matmul %20, %21, %cst_16 {dimension_numbers = #tpu.dot_dimension_numbers<[1], [0], [0], [1], [0, 0, 1, 1], [], []>} : vector<8x512xbf16>, vector<512x128xbf16>, vector<8x128xf32> -> vector<8x128xf32>
    %c0_17 = arith.constant 0 : index
    %c0_18 = arith.constant 0 : index
    %23 = vector.load %arg8[%c0_17, %c0_18] : memref<1x128xf32, #tpu.memory_space<vmem>>, vector<1x128xf32>
    %24 = vector.broadcast %23 : vector<1x128xf32> to vector<8x128xf32>
    %25 = arith.addf %22, %24 : vector<8x128xf32>
    %cst_19 = arith.constant 0.000000e+00 : f32
    %26 = vector.broadcast %cst_19 : f32 to vector<8x128xf32>
    %27 = arith.maximumf %25, %26 : vector<8x128xf32>
    %c0_20 = arith.constant 0 : index
    %c0_21 = arith.constant 0 : index
    %28 = vector.load %arg9[%c0_20, %c0_21] : memref<8x128xf32, #tpu.memory_space<vmem>>, vector<8x128xf32>
    tpu.vector_store %arg9[%c0_20, %c0_21], %27 {strides = array<i32>} : memref<8x128xf32, #tpu.memory_space<vmem>>, vector<8x128xf32>,
    return
  }
  func.func @transform_0(%arg0: i32) -> (i32, i32) {
    %c0_i32 = arith.constant 0 : i32
    %c0_i32_0 = arith.constant 0 : i32
    return %arg0, %c0_i32 : i32, i32
  }
  func.func @transform_1(%arg0: i32) -> (i32, i32) {
    %c0_i32 = arith.constant 0 : i32
    %c0_i32_0 = arith.constant 0 : i32
    return %arg0, %c0_i32 : i32, i32
  }
  func.func @transform_2(%arg0: i32) -> (i32, i32) {
    %c0_i32 = arith.constant 0 : i32
    %c0_i32_0 = arith.constant 0 : i32
    %c0_i32_1 = arith.constant 0 : i32
    return %c0_i32, %c0_i32_0 : i32, i32
  }
  func.func @transform_3(%arg0: i32) -> (i32, i32) {
    %c0_i32 = arith.constant 0 : i32
    %c0_i32_0 = arith.constant 0 : i32
    %c0_i32_1 = arith.constant 0 : i32
    return %c0_i32, %c0_i32_0 : i32, i32
  }
  func.func @transform_4(%arg0: i32) -> (i32, i32) {
    %c0_i32 = arith.constant 0 : i32
    %c0_i32_0 = arith.constant 0 : i32
    %c0_i32_1 = arith.constant 0 : i32
    return %c0_i32, %c0_i32_0 : i32, i32
  }
  func.func @transform_5(%arg0: i32) -> (i32, i32) {
    %c0_i32 = arith.constant 0 : i32
    %c0_i32_0 = arith.constant 0 : i32
    %c0_i32_1 = arith.constant 0 : i32
    return %c0_i32, %c0_i32_0 : i32, i32
  }
  func.func @transform_6(%arg0: i32) -> (i32, i32) {
    %c0_i32 = arith.constant 0 : i32
    %c0_i32_0 = arith.constant 0 : i32
    %c0_i32_1 = arith.constant 0 : i32
    return %c0_i32, %c0_i32_0 : i32, i32
  }
  func.func @transform_7(%arg0: i32) -> (i32, i32) {
    %c0_i32 = arith.constant 0 : i32
    %c0_i32_0 = arith.constant 0 : i32
    %c0_i32_1 = arith.constant 0 : i32
    return %c0_i32, %c0_i32_0 : i32, i32
  }
  func.func @transform_8(%arg0: i32) -> (i32, i32) {
    %c0_i32 = arith.constant 0 : i32
    %c0_i32_0 = arith.constant 0 : i32
    return %arg0, %c0_i32 : i32, i32
  }
}

</mosaic_0001>

<bundles_post_ra>
// kernel: tpu_custom_call.1
= control target key start
LH: loop header
LB: loop body
LE: loop exit
PB: predicated region body
PF: predicated region fallthrough
CT: control target
= control target key end

     0   :  { %13 = vsyncpa [#allocation3], 0  ;;  %s983_s0 = inlined_call_operand.hbm [shape: f32[8,32], index: 0, kind: input, shape index: {}]   ;;  %s984_s1 = inlined_call_operand.hbm [shape: f32[8,32], index: 1, kind: input, shape index: {}]   ;;  %s985_s2 = inlined_call_operand.hbm [shape: bf16[32,256], index: 2, kind: input, shape index: {}]   ;;  %s986_s3 = inlined_call_operand.vmem [shape: f32[1,256], index: 3, kind: input, shape index: {}]   ;;  %s987_s4 = inlined_call_operand.hbm [shape: bf16[32,256], index: 4, kind: input, shape index: {}]   ;;  %s988_s5 = inlined_call_operand.vmem [shape: f32[1,256], index: 5, kind: input, shape index: {}]   ;;  %s989_s6 = inlined_call_operand.hbm [shape: bf16[512,128], index: 6, kind: input, shape index: {}]   ;;  %s990_s7 = inlined_call_operand.vmem [shape: f32[1,128], index: 7, kind: input, shape index: {}]   ;;  %s991_s8 = inlined_call_operand.hbm [shape: f32[8,128], index: 8, kind: output, shape index: {}]  }
   0x1   :  { %14 = vsyncpa [#allocation6], 0 }
   0x2   :  { %15 = vsyncpa [#allocation9], 0 }
   0x3   :  { %16 = vsyncpa [#allocation4], 0  ;;  %s900_s27 = smov [#allocation5]  }
   0x4   :  { %s33_s28 = sshll.u32 %s900_s27, 4  ;;  %s34_s28 = int_to_ptr.vmem [resolvable:$true] %s33_s28 }
   0x5   :  { %s780_s29 = scalar_lea.vmem %s34_s28, 128  ;;  %p785_p1 = scmp.lt.s32.totalorder %s34_s28, %s34_s28 }
   0x6   :  { %p781_p0 = scmp.ne.s32.totalorder %s34_s28, %s780_s29  ;;  %p786_p2 = scmp.lt.s32.totalorder %s780_s29, %s780_s29 }
   0x8   :  { %p787_p3 = por %p786_p2, %p785_p1 }
   0xa   :  { %p788_p4 = pnand %p787_p3, %p781_p0 }
   0xc   :  { %791 = shalt.err (!%p788_p4)
}
   0xd   :  { %36 = dma.hbm_to_vmem [thread:$0]  %s984_s1, 128, %s34_s28, [#allocation6]  }
   0xe   :  { %s901_s10 = smov [#allocation8]   ;;  %s902_s12 = smov [#allocation2]  }
   0xf   :  { %s56_s11 = sshll.u32 %s901_s10, 4  ;;  %s23_s13 = sshll.u32 %s902_s12, 4  ;;  %s57_s11 = int_to_ptr.vmem [resolvable:$true] %s56_s11  ;;  %s24_s13 = int_to_ptr.vmem [resolvable:$true] %s23_s13 }
  0x10   :  { %s800_s14 = scalar_lea.vmem %s57_s11, 512  ;;  %p805_p6 = scmp.lt.s32.totalorder %s57_s11, %s57_s11 }
  0x11   :  { %p801_p5 = scmp.ne.s32.totalorder %s57_s11, %s800_s14  ;;  %p806_p7 = scmp.lt.s32.totalorder %s800_s14, %s800_s14 }
  0x13   :  { %p807_p8 = por %p806_p7, %p805_p6 }
  0x15   :  { %p808_p9 = pnand %p807_p8, %p801_p5 }
  0x17   :  { %811 = shalt.err (!%p808_p9)
}
  0x18   :  { %s903_s15 = smov 128   ;;  %s904_s16 = smov 8  }
  0x19   :  { %62 = dma.hbm_to_vmem [thread:$0]  %s987_s4, 512, %s57_s11, [#allocation9], %s903_s15, %s903_s15, %s904_s16  }
  0x1a   :  { %s820_s1 = scalar_lea.vmem %s24_s13, 128  ;;  %p825_p11 = scmp.lt.s32.totalorder %s24_s13, %s24_s13 }
  0x1b   :  { %p821_p10 = scmp.ne.s32.totalorder %s24_s13, %s820_s1  ;;  %p826_p12 = scmp.lt.s32.totalorder %s820_s1, %s820_s1 }
  0x1d   :  { %p827_p13 = por %p826_p12, %p825_p11 }
  0x1f   :  { %p828_p0 = pnand %p827_p13, %p821_p10 }
  0x21   :  { %831 = shalt.err (!%p828_p0)
}
  0x22   :  { %26 = dma.hbm_to_vmem [thread:$0]  %s983_s0, 128, %s24_s13, [#allocation3]  }
  0x23   :  { %s905_s21 = smov [#allocation7]   ;;  %s906_s23 = smov [#allocation10]  }
  0x24   :  { %s42_s22 = sshll.u32 %s905_s21, 4  ;;  %s70_s24 = sshll.u32 %s906_s23, 4  ;;  %s43_s22 = int_to_ptr.vmem [resolvable:$true] %s42_s22  ;;  %s71_s24 = int_to_ptr.vmem [resolvable:$true] %s70_s24 }
  0x25   :  { %s840_s25 = scalar_lea.vmem %s43_s22, 512  ;;  %p845_p2 = scmp.lt.s32.totalorder %s43_s22, %s43_s22 }
  0x26   :  { %p841_p1 = scmp.ne.s32.totalorder %s43_s22, %s840_s25  ;;  %p846_p3 = scmp.lt.s32.totalorder %s840_s25, %s840_s25 }
  0x28   :  { %p847_p4 = por %p846_p3, %p845_p2 }
  0x2a   :  { %p848_p5 = pnand %p847_p4, %p841_p1 }
  0x2c   :  { %851 = shalt.err (!%p848_p5)
}
  0x2d   :  { %48 = dma.hbm_to_vmem [thread:$0]  %s985_s2, 512, %s43_s22, [#allocation6], %s903_s15, %s903_s15, %s904_s16  }
  0x2e   :  { %s860_s27 = scalar_lea.vmem %s71_s24, 4096  ;;  %p865_p7 = scmp.lt.s32.totalorder %s71_s24, %s71_s24 }
  0x2f   :  { %p861_p6 = scmp.ne.s32.totalorder %s71_s24, %s860_s27  ;;  %p866_p8 = scmp.lt.s32.totalorder %s860_s27, %s860_s27 }
  0x31   :  { %p867_p9 = por %p866_p8, %p865_p7 }
  0x33   :  { %p868_p10 = pnand %p867_p9, %p861_p6 }
  0x35   :  { %871 = shalt.err (!%p868_p10)
}
  0x36   :  { %s907_s0 = smov 64   ;;  %s908_s28 = smov 4  }
  0x37   :  { %76 = dma.hbm_to_vmem [thread:$0]  %s989_s6, 4096, %s71_s24, [#allocation9], %s907_s0, %s907_s0, %s908_s28  }
  0x38   :  { %892 = dma.done.wait [#allocation3], 128  }
  0x39   :  { %893 = vsyncadd [#allocation3], 4294967168 }
  0x3a   :  { %894 = dma.done.wait [#allocation6], 640  }
  0x3b   :  { %895 = vsyncadd [#allocation6], 4294966656 }
  0x3c   :  { %896 = dma.done.wait [#allocation9], 4608  }
  0x3d   :  { %897 = vsyncadd [#allocation9], 4294962688  ;;  %v909_v0 = vmov 0   ;;  %v728_v1 = vld [vmem:[#allocation7 + $0x14] ss:$8 sps:$4 sm:$0xff]   ;;  %vm133_vm0 = vcmask 261120   ;;  %v103_v45 = vlaneseq }
  0x3e   :  { %169 = vmatprep.mubr.bf16.mxu0 %v909_v0  ;;  %255 = vmatprep.mubr.bf16.mxu1 %v909_v0  ;;  %v730_v2 = vld [vmem:[#allocation8 + $0x14] ss:$8 sps:$4 sm:$0xff]   ;;  %v732_v3 = vld [vmem:[#allocation7 + $0x10] ss:$8 sps:$4 sm:$0xff]   ;;  %v734_v5 = vld [vmem:[#allocation7 + $0x4] ss:$8 sps:$4 sm:$0xff]  }
  0x3f   :  { %149 = vmatprep.subr.bf16.mxu0 %v728_v1  ;;  %v733_v4 = vld [vmem:[#allocation8 + $0x10] ss:$8 sps:$4 sm:$0xff]   ;;  %235 = vmatprep.subr.bf16.mxu1 %v730_v2  ;;  %v736_v6 = vld [vmem:[#allocation8 + $0x4] ss:$8 sps:$4 sm:$0xff]   ;;  %v738_v7 = vld [vmem:[#allocation7] ss:$8 sps:$4 sm:$0xff]  }
  0x40   :  { %150 = vmatpush1.bf16.msra.mxu0 %v732_v3  ;;  %236 = vmatpush1.bf16.msra.mxu1 %v733_v4  ;;  %v739_v8 = vld [vmem:[#allocation8] ss:$8 sps:$4 sm:$0xff]   ;;  %v95_v9 = vld [vmem:[#allocation2] sm:$0xff]  ;;  %v182_v10 = vld [vmem:[#allocation5] sm:$0xff]  ;;  %v104_v46 = vshrl.u32 %v103_v45, 7  ;;  %s910_s11 = smov [#allocation11]  }
  0x41   :  { %151 = vmatprep.subr.bf16.mxu0 %v734_v5  ;;  %237 = vmatprep.subr.bf16.mxu1 %v736_v6  ;;  %v740_v11 = vld [vmem:[#allocation10 + $0x78] sm:$0xff]   ;;  %v96_v12 = vpack.c.bf16 %v95_v9, %v95_v9  ;;  %v183_v13 = vpack.c.bf16 %v182_v10, %v182_v10  ;;  %v744_v17 = vld [vmem:[#allocation10 + $0x70] sm:$0xff]   ;;  %v748_v21 = vld [vmem:[#allocation10 + $0x68] sm:$0xff]   ;;  %s619_s12 = sshll.u32 %s910_s11, 4  ;;  %s620_s12 = int_to_ptr.vmem [resolvable:$true] %s619_s12 }
  0x42   :  { %v741_v14 = vld [vmem:[#allocation10 + $0xf8] sm:$0xff]   ;;  %v745_v18 = vld [vmem:[#allocation10 + $0xf0] sm:$0xff]   ;;  %v749_v22 = vld [vmem:[#allocation10 + $0xe8] sm:$0xff]   ;;  %v105_v47 = vsub.s32 0, %v104_v46  ;;  %v109_v50 = vsub.s32 1, %v104_v46  ;;  %s872_s13 = scalar_lea.vmem %s620_s12, 128  ;;  %p877_p12 = scmp.lt.s32.totalorder %s620_s12, %s620_s12 }
  0x43   :  { %v742_v15 = vld [vmem:[#allocation10 + $0x38] sm:$0xff]   ;;  %v746_v19 = vld [vmem:[#allocation10 + $0x30] sm:$0xff]   ;;  %v750_v23 = vld [vmem:[#allocation10 + $0x28] sm:$0xff]   ;;  %p873_p11 = scmp.ne.s32.totalorder %s620_s12, %s872_s13  ;;  %p878_p13 = scmp.lt.s32.totalorder %s872_s13, %s872_s13 }
  0x44   :  { %152 = vmatpush1.bf16.msra.mxu0 %v738_v7  ;;  %238 = vmatpush1.bf16.msra.mxu1 %v739_v8  ;;  %v743_v16 = vld [vmem:[#allocation10 + $0xb8] sm:$0xff]   ;;  %v747_v20 = vld [vmem:[#allocation10 + $0xb0] sm:$0xff]   ;;  %v751_v24 = vld [vmem:[#allocation10 + $0xa8] sm:$0xff]  }
  0x45   :  { %673 = vmatprep.subr.bf16.mxu0 %v740_v11  ;;  %695 = vmatprep.subr.bf16.mxu1 %v741_v14  ;;  %v752_v25 = vld [vmem:[#allocation10 + $0x60] sm:$0xff]   ;;  %v756_v29 = vld [vmem:[#allocation10 + $0x58] sm:$0xff]   ;;  %v760_v33 = vld [vmem:[#allocation10 + $0x50] sm:$0xff]   ;;  %p879_p0 = por %p878_p13, %p877_p12 }
  0x46   :  { %v753_v26 = vld [vmem:[#allocation10 + $0xe0] sm:$0xff]   ;;  %v757_v30 = vld [vmem:[#allocation10 + $0xd8] sm:$0xff]   ;;  %v761_v34 = vld [vmem:[#allocation10 + $0xd0] sm:$0xff]  }
  0x47   :  { %634 = vmatmul.mubr.msk.bf16.vlgmr.msra.gmra.mxu0 %vm133_vm0, %v96_v12  ;;  %639 = vmatmul.mubr.msk.bf16.vlgmr.msra.gmra.mxu1 %vm133_vm0, %v183_v13  ;;  %v754_v27 = vld [vmem:[#allocation10 + $0x20] sm:$0xff]   ;;  %v758_v31 = vld [vmem:[#allocation10 + $0x18] sm:$0xff]   ;;  %v762_v35 = vld [vmem:[#allocation10 + $0x10] sm:$0xff]   ;;  %p880_p1 = pnand %p879_p0, %p873_p11 }
  0x48   :  { %674 = vmatpush3.bf16.msra.mxu0 %v742_v15  ;;  %696 = vmatpush3.bf16.msra.mxu1 %v743_v16  ;;  %v755_v28 = vld [vmem:[#allocation10 + $0xa0] sm:$0xff]   ;;  %v759_v32 = vld [vmem:[#allocation10 + $0x98] sm:$0xff]   ;;  %v763_v36 = vld [vmem:[#allocation10 + $0x90] sm:$0xff]  }
  0x49   :  { %675 = vmatprep.subr.bf16.mxu0 %v744_v17  ;;  %697 = vmatprep.subr.bf16.mxu1 %v745_v18  ;;  %v764_v37 = vld [vmem:[#allocation10 + $0x48] sm:$0xff]   ;;  %v768_v41 = vld [vmem:[#allocation10 + $0x40] sm:$0xff]   ;;  %v101_v48 = vld [vmem:[%s986_s3] sm:$0x3] }
  0x4a   :  { %v765_v38 = vld [vmem:[#allocation10 + $0xc8] sm:$0xff]   ;;  %v769_v42 = vld [vmem:[#allocation10 + $0xc0] sm:$0xff]   ;;  %v188_v49 = vld [vmem:[%s988_s5] sm:$0x3]  ;;  %v106_v51 = vrot.slane %v101_v48, %v105_v47  ;;  %v110_v53 = vrot.slane %v101_v48, %v109_v50 }
  0x4b   :  { %v766_v39 = vld [vmem:[#allocation10 + $0x8] sm:$0xff]   ;;  %v770_v43 = vld [vmem:[#allocation10] sm:$0xff]   ;;  %v193_v52 = vrot.slane %v188_v49, %v105_v47  ;;  %v197_v54 = vrot.slane %v188_v49, %v109_v50  ;;  %v640_v13 = vld [vmem:[%s990_s7] ss:$0 sm:$0xff] }
  0x4c   :  { %676 = vmatpush3.bf16.msra.mxu0 %v746_v19  ;;  %698 = vmatpush3.bf16.msra.mxu1 %v747_v20  ;;  %v767_v40 = vld [vmem:[#allocation10 + $0x88] sm:$0xff]   ;;  %v771_v44 = vld [vmem:[#allocation10 + $0x80] sm:$0xff]  }
  0x4d   :  { %677 = vmatprep.subr.bf16.mxu0 %v748_v21  ;;  %699 = vmatprep.subr.bf16.mxu1 %v749_v22 }
  0x50   :  { %678 = vmatpush3.bf16.msra.mxu0 %v750_v23  ;;  %700 = vmatpush3.bf16.msra.mxu1 %v751_v24 }
  0x51   :  { %679 = vmatprep.subr.bf16.mxu0 %v752_v25  ;;  %701 = vmatprep.subr.bf16.mxu1 %v753_v26 }
  0x54   :  { %680 = vmatpush3.bf16.msra.mxu0 %v754_v27  ;;  %702 = vmatpush3.bf16.msra.mxu1 %v755_v28 }
  0x55   :  { %681 = vmatprep.subr.bf16.mxu0 %v756_v29  ;;  %703 = vmatprep.subr.bf16.mxu1 %v757_v30 }
  0x58   :  { %682 = vmatpush3.bf16.msra.mxu0 %v758_v31  ;;  %704 = vmatpush3.bf16.msra.mxu1 %v759_v32 }
  0x59   :  { %683 = vmatprep.subr.bf16.mxu0 %v760_v33  ;;  %705 = vmatprep.subr.bf16.mxu1 %v761_v34 }
  0x5c   :  { %684 = vmatpush3.bf16.msra.mxu0 %v762_v35  ;;  %706 = vmatpush3.bf16.msra.mxu1 %v763_v36 }
  0x5d   :  { %685 = vmatprep.subr.bf16.mxu0 %v764_v37  ;;  %707 = vmatprep.subr.bf16.mxu1 %v765_v38 }
  0x60   :  { %686 = vmatpush3.bf16.msra.mxu0 %v766_v39  ;;  %708 = vmatpush3.bf16.msra.mxu1 %v767_v40 }
  0x61   :  { %687 = vmatprep.subr.bf16.mxu0 %v768_v41  ;;  %709 = vmatprep.subr.bf16.mxu1 %v769_v42 }
  0x64   :  { %688 = vmatpush3.bf16.msra.mxu0 %v770_v43  ;;  %710 = vmatpush3.bf16.msra.mxu1 %v771_v44 }
 0x107   :  { %v171_v55 = vpop.f32.mrf.mxu0  ;;  %v257_v56 = vpop.f32.mrf.mxu1 }
 0x108   :  { %v172_v57 = vadd.f32 %v171_v55, %v106_v51  ;;  %v258_v58 = vadd.f32 %v257_v56, %v193_v52 }
 0x109   :  { %v173_v59 = vpop.f32.mrf.mxu0  ;;  %v259_v60 = vpop.f32.mrf.mxu1 }
 0x10a   :  { %v264_v61 = vmax.f32 %v258_v58, 0.0  ;;  %v174_v62 = vadd.f32 %v173_v59, %v110_v53  ;;  %v260_v63 = vadd.f32 %v259_v60, %v197_v54  ;;  %v178_v0 = vmax.f32 %v172_v57, 0.0 }
 0x10b   :  { %v175_v1 = vpop.f32.mrf.mxu0  ;;  %v261_v2 = vpop.f32.mrf.mxu1 }
 0x10c   :  { %v179_v3 = vmax.f32 %v174_v62, 0.0  ;;  %v265_v4 = vmax.f32 %v260_v63, 0.0  ;;  %v266_v5 = vpack.c.bf16 %v264_v61, %v264_v61  ;;  %v180_v10 = vpack.c.bf16 %v178_v0, %v178_v0 }
 0x10d   :  { %v176_v6 = vpop.f32.mrf.mxu0  ;;  %v262_v7 = vpop.f32.mrf.mxu1 }
 0x10e   :  { %v181_v8 = vpack.c.bf16 %v179_v3, %v179_v3  ;;  %v267_v9 = vpack.c.bf16 %v265_v4, %v265_v4 }
 0x110   :  { %563 = vmatprep.mubr.bf16.mxu0 %v181_v8  ;;  %603 = vmatprep.mubr.bf16.mxu1 %v267_v9 }
 0x111   :  { %564 = vmatmul.mubr.bf16.vlgmr.msra.gmra.mxu0 %v180_v10  ;;  %604 = vmatmul.mubr.bf16.vlgmr.msra.gmra.mxu1 %v266_v5 }
 0x1d1   :  { %v689_v11 = vpop.f32.mrf.mxu0  ;;  %v711_v12 = vpop.f32.mrf.mxu1 }
 0x1d3   :  { %v690_v14 = vpop.f32.mrf.mxu0  ;;  %v712_v15 = vpop.f32.mrf.mxu1 }
 0x1d4   :  { %v691_v16 = vadd.f32 %v690_v14, %v689_v11  ;;  %v713_v20 = vadd.f32 %v712_v15, %v711_v12 }
 0x1d5   :  { %v692_v17 = vpop.f32.mrf.mxu0  ;;  %v714_v18 = vpop.f32.mrf.mxu1 }
 0x1d6   :  { %v566_v19 = vadd.f32 %v691_v16, %v640_v13 }
 0x1d7   :  { %v693_v21 = vpop.f32.mrf.mxu0  ;;  %v715_v22 = vpop.f32.mrf.mxu1 }
 0x1d8   :  { %v606_v23 = vadd.f32 %v713_v20, %v566_v19 }
 0x1da   :  { %v611_v24 = vmax.f32 %v606_v23, 0.0 }
 0x1dc   :  { %612 = vst [vmem:[#allocation11] sm:$0xff] %v611_v24 }
 0x1dd   :  { %883 = shalt.err (!%p880_p1)
}
 0x1de   :  { %622 = dma.vmem_to_hbm [thread:$0]  %s620_s12, 128, %s991_s8, [#allocation4]  }
 0x1df   :  { %898 = dma.done.wait [#allocation4], 128  }
 0x1e0   :  { %899 = vsyncadd [#allocation4], 4294967168 }
 0x1e1   :  { %626 = vsyncpa [#allocation3], 1 }
 0x1e2   :  { %627 = vsyncpa [#allocation6], 1 }
 0x1e3   :  { %628 = vsyncpa [#allocation9], 1 }
 0x1e4   :  { %629 = vsyncpa [#allocation4], 1 }

</bundles_post_ra>
